<compile_context>
chip_gen: v6e
topology: v6e:2x2x1
jax: 0.10.0
libtpu: 0.0.40
codegen_flags: <defaults>
</compile_context>

<pallas_src>
import math
import jax
import jax.numpy as jnp
from jax.experimental import pallas as pl
from jax.experimental.pallas import tpu as pltpu

EMB = 32          # embedding_size
NHEAD = 4         # nhead
HEAD_DIM = EMB // NHEAD
INTERNAL = 64     # internal_size
LN_EPS = 1e-5


def _layernorm(x, gamma, beta):
    mu = jnp.mean(x, axis=-1, keepdims=True)
    var = jnp.mean((x - mu) ** 2, axis=-1, keepdims=True)
    return (x - mu) * jax.lax.rsqrt(var + LN_EPS) * gamma + beta


def transf_block_kernel(mKh_ref, mQh_ref, mVh_ref, mV_ref,
                        wqT_ref, bq_ref, wkT_ref, bk_ref, wvT_ref, bv_ref,
                        woT_ref, bo_ref,
                        g1_ref, be1_ref, g2_ref, be2_ref,
                        w1T_ref, b1_ref, w2T_ref, b2_ref, w3T_ref, b3_ref,
                        out_ref):
    H, S, D = mQh_ref.shape[1:]          # heads, seq, head_dim (static ints)

    mKh = mKh_ref[0]                     # (H, S, D)
    mQh = mQh_ref[0]
    mVh = mVh_ref[0]
    mV = mV_ref[0]                       # (S, E) — residual path

    # Load every parameter once (grouped vector loads, hidden under the matmuls).
    wqT, bq = wqT_ref[...], bq_ref[...]
    wkT, bk = wkT_ref[...], bk_ref[...]
    wvT, bv = wvT_ref[...], bv_ref[...]
    woT, bo = woT_ref[...], bo_ref[...]      # woT: (H, D, E)
    g1, be1 = g1_ref[...], be1_ref[...]
    g2, be2 = g2_ref[...], be2_ref[...]
    w1T, b1 = w1T_ref[...], b1_ref[...]
    w2T, b2 = w2T_ref[...], b2_ref[...]
    w3T, b3 = w3T_ref[...], b3_ref[...]

    scale = 1.0 / math.sqrt(D)

    # --- fused per-head Q/K/V projections: one matmul each over (H*S, D) ---
    def project(x, wT, bias):
        y = jnp.dot(x.reshape(H * S, D), wT,
                    preferred_element_type=jnp.float32) + bias
        return y.reshape(H, S, D)

    q = project(mQh, wqT, bq)
    k = project(mKh, wkT, bk)
    v = project(mVh, wvT, bv)

    # --- heads-leading batched attention (flash-style einsums) ---
    s = jnp.einsum('hqd,hkd->hqk', q, k,
                   preferred_element_type=jnp.float32) * scale      # (H, S, S)
    s = s - jnp.max(s, axis=-1, keepdims=True)
    p = jnp.exp(s)
    p = p * pl.reciprocal(jnp.sum(p, axis=-1, keepdims=True))        # EUP recip
    o = jnp.einsum('hqk,hkd->hqd', p, v,
                   preferred_element_type=jnp.float32)               # (H, S, D)

    # --- output projection folded over heads (no (H,S,D)->(S,E) relayout) ---
    attn = jnp.dot(o[0], woT[0], preferred_element_type=jnp.float32)
    for h in range(1, H):
        attn = attn + jnp.dot(o[h], woT[h],
                              preferred_element_type=jnp.float32)
    attn_res = attn + bo + mV                                        # (S, E)

    # --- LayerNorm 1 (dropout = identity) ---
    norm1 = _layernorm(attn_res, g1, be1)

    # --- MLP: Linear(E,I) -> ReLU -> Linear(I,I) -> ReLU -> Linear(I,E) ---
    h1 = jnp.maximum(jnp.dot(norm1, w1T,
                             preferred_element_type=jnp.float32) + b1, 0.0)
    h2 = jnp.maximum(jnp.dot(h1, w2T,
                             preferred_element_type=jnp.float32) + b2, 0.0)
    nn_out = jnp.dot(h2, w3T, preferred_element_type=jnp.float32) + b3

    # --- residual + LayerNorm 2 (dropout = identity) ---
    out_ref[0] = _layernorm(nn_out + norm1, g2, be2)


def _param_spec(shape):
    nd = len(shape)
    return pl.BlockSpec(shape, lambda b, _nd=nd: (0,) * _nd)


@jax.jit
def transf_block(mK, mQ, mV, params):
    (wq, bq, wk, bk, wv, bv, wo, bo, g1, be1, g2, be2,
     w1, b1, w2, b2, w3, b3) = params
    B, S, E = mK.shape
    H, D = NHEAD, HEAD_DIM

    # Wrapper-side layout plumbing: heads-leading inputs, pre-transposed weights.
    def to_heads(x):
        return x.reshape(B, S, H, D).transpose(0, 2, 1, 3)   # (B, H, S, D)

    mKh, mQh, mVh = to_heads(mK), to_heads(mQ), to_heads(mV)

    kparams = [
        wq.T, bq, wk.T, bk, wv.T, bv,
        wo.T.reshape(H, D, E), bo,
        g1, be1, g2, be2,
        w1.T, b1, w2.T, b2, w3.T, b3,
    ]

    head_spec = pl.BlockSpec((1, H, S, D), lambda b: (b, 0, 0, 0))
    seq_spec = pl.BlockSpec((1, S, E), lambda b: (b, 0, 0))
    param_specs = [_param_spec(p.shape) for p in kparams]

    return pl.pallas_call(
        transf_block_kernel,
        out_shape=jax.ShapeDtypeStruct((B, S, E), jnp.float32),
        grid_spec=pltpu.PrefetchScalarGridSpec(
            num_scalar_prefetch=0,
            grid=(B,),
            in_specs=[head_spec, head_spec, head_spec, seq_spec] + param_specs,
            out_specs=seq_spec,
        ),
        compiler_params=pltpu.CompilerParams(
            dimension_semantics=("parallel",)),
    )(mKh, mQh, mVh, mV, *kparams)


def init_params(key):
    ks = jax.random.split(key, 12)

    def w(k, shape, scale=0.1):
        return (scale * jax.random.normal(k, shape)).astype(jnp.float32)

    D, E, I = HEAD_DIM, EMB, INTERNAL
    params = [
        w(ks[0], (D, D)), w(ks[1], (1, D)),      # Q
        w(ks[2], (D, D)), w(ks[3], (1, D)),      # K
        w(ks[4], (D, D)), w(ks[5], (1, D)),      # V
        w(ks[6], (E, E)), w(ks[7], (1, E)),      # O
        jnp.ones((1, E), jnp.float32), jnp.zeros((1, E), jnp.float32),   # norm1
        jnp.ones((1, E), jnp.float32), jnp.zeros((1, E), jnp.float32),   # norm2
        w(ks[8], (I, E)), jnp.zeros((1, I), jnp.float32),                # nn L1
        w(ks[9], (I, I)), jnp.zeros((1, I), jnp.float32),                # nn L2
        w(ks[10], (E, I)), jnp.zeros((1, E), jnp.float32),               # nn L3
    ]
    return params


def reference(mK, mQ, mV, params):
    (wq, bq, wk, bk, wv, bv, wo, bo, g1, be1, g2, be2,
     w1, b1, w2, b2, w3, b3) = params
    B, S, E = mK.shape
    split = lambda x: x.reshape(B, S, NHEAD, HEAD_DIM)
    Q = (split(mQ) @ wq.T + bq).transpose(0, 2, 1, 3)
    K = (split(mK) @ wk.T + bk).transpose(0, 2, 1, 3)
    V = (split(mV) @ wv.T + bv).transpose(0, 2, 1, 3)
    s = (Q @ jnp.swapaxes(K, -1, -2)) / math.sqrt(HEAD_DIM)
    p = jax.nn.softmax(s, axis=-1)
    o = (p @ V).transpose(0, 2, 1, 3).reshape(B, S, E)
    attn = o @ wo.T + bo
    x = attn + mV

    def ln(x, g, b):
        mu = x.mean(-1, keepdims=True)
        var = ((x - mu) ** 2).mean(-1, keepdims=True)
        return (x - mu) / jnp.sqrt(var + LN_EPS) * g + b

    n1 = ln(x, g1, be1)
    h = jnp.maximum(n1 @ w1.T + b1, 0.0)
    h = jnp.maximum(h @ w2.T + b2, 0.0)
    nn_out = h @ w3.T + b3
    return ln(nn_out + n1, g2, be2)


if __name__ == "__main__":
    B, S = 2, 8
    key = jax.random.PRNGKey(0)
    kk, kq, kv, kp = jax.random.split(key, 4)
    mK = jax.random.normal(kk, (B, S, EMB), jnp.float32)
    mQ = jax.random.normal(kq, (B, S, EMB), jnp.float32)
    mV = jax.random.normal(kv, (B, S, EMB), jnp.float32)
    params = init_params(kp)

    out = transf_block(mK, mQ, mV, params)
    out = jax.block_until_ready(out)

    ref = reference(mK, mQ, mV, params)
    assert out.shape == (B, S, EMB)
    assert jnp.allclose(out, ref, atol=1e-4, rtol=1e-4), "mismatch vs reference"
    print("KERNEL_OK")
</pallas_src>

<mosaic_0001>
module attributes {stable_mosaic.version = 11 : i64} {
  func.func @transf_block_kernel(%arg0: i32, %arg1: memref<1x4x8x8xf32, #tpu.memory_space<vmem>>, %arg2: memref<1x4x8x8xf32, #tpu.memory_space<vmem>>, %arg3: memref<1x4x8x8xf32, #tpu.memory_space<vmem>>, %arg4: memref<1x8x32xf32, #tpu.memory_space<vmem>>, %arg5: memref<8x8xf32, #tpu.memory_space<vmem>>, %arg6: memref<1x8xf32, #tpu.memory_space<vmem>>, %arg7: memref<8x8xf32, #tpu.memory_space<vmem>>, %arg8: memref<1x8xf32, #tpu.memory_space<vmem>>, %arg9: memref<8x8xf32, #tpu.memory_space<vmem>>, %arg10: memref<1x8xf32, #tpu.memory_space<vmem>>, %arg11: memref<4x8x32xf32, #tpu.memory_space<vmem>>, %arg12: memref<1x32xf32, #tpu.memory_space<vmem>>, %arg13: memref<1x32xf32, #tpu.memory_space<vmem>>, %arg14: memref<1x32xf32, #tpu.memory_space<vmem>>, %arg15: memref<1x32xf32, #tpu.memory_space<vmem>>, %arg16: memref<1x32xf32, #tpu.memory_space<vmem>>, %arg17: memref<32x64xf32, #tpu.memory_space<vmem>>, %arg18: memref<1x64xf32, #tpu.memory_space<vmem>>, %arg19: memref<64x64xf32, #tpu.memory_space<vmem>>, %arg20: memref<1x64xf32, #tpu.memory_space<vmem>>, %arg21: memref<64x32xf32, #tpu.memory_space<vmem>>, %arg22: memref<1x32xf32, #tpu.memory_space<vmem>>, %arg23: memref<1x8x32xf32, #tpu.memory_space<vmem>>) attributes {dimension_semantics = [#tpu.dimension_semantics<parallel>], iteration_bounds = array<i64: 2>, scalar_prefetch = 0 : i64, scratch_operands = 0 : i64, tpu.core_type = #tpu.core_type<tc>, window_params = [{transform_indices = @transform_0, window_bounds = array<i64: 1, 4, 8, 8>}, {transform_indices = @transform_1, window_bounds = array<i64: 1, 4, 8, 8>}, {transform_indices = @transform_2, window_bounds = array<i64: 1, 4, 8, 8>}, {transform_indices = @transform_3, window_bounds = array<i64: 1, 8, 32>}, {pipeline_mode = #tpu.pipeline_mode<synchronous>, transform_indices = @transform_4, window_bounds = array<i64: 8, 8>}, {pipeline_mode = #tpu.pipeline_mode<synchronous>, transform_indices = @transform_5, window_bounds = array<i64: 1, 8>}, {pipeline_mode = #tpu.pipeline_mode<synchronous>, transform_indices = @transform_6, window_bounds = array<i64: 8, 8>}, {pipeline_mode = #tpu.pipeline_mode<synchronous>, transform_indices = @transform_7, window_bounds = array<i64: 1, 8>}, {pipeline_mode = #tpu.pipeline_mode<synchronous>, transform_indices = @transform_8, window_bounds = array<i64: 8, 8>}, {pipeline_mode = #tpu.pipeline_mode<synchronous>, transform_indices = @transform_9, window_bounds = array<i64: 1, 8>}, {pipeline_mode = #tpu.pipeline_mode<synchronous>, transform_indices = @transform_10, window_bounds = array<i64: 4, 8, 32>}, {pipeline_mode = #tpu.pipeline_mode<synchronous>, transform_indices = @transform_11, window_bounds = array<i64: 1, 32>}, {pipeline_mode = #tpu.pipeline_mode<synchronous>, transform_indices = @transform_12, window_bounds = array<i64: 1, 32>}, {pipeline_mode = #tpu.pipeline_mode<synchronous>, transform_indices = @transform_13, window_bounds = array<i64: 1, 32>}, {pipeline_mode = #tpu.pipeline_mode<synchronous>, transform_indices = @transform_14, window_bounds = array<i64: 1, 32>}, {pipeline_mode = #tpu.pipeline_mode<synchronous>, transform_indices = @transform_15, window_bounds = array<i64: 1, 32>}, {pipeline_mode = #tpu.pipeline_mode<synchronous>, transform_indices = @transform_16, window_bounds = array<i64: 32, 64>}, {pipeline_mode = #tpu.pipeline_mode<synchronous>, transform_indices = @transform_17, window_bounds = array<i64: 1, 64>}, {pipeline_mode = #tpu.pipeline_mode<synchronous>, transform_indices = @transform_18, window_bounds = array<i64: 64, 64>}, {pipeline_mode = #tpu.pipeline_mode<synchronous>, transform_indices = @transform_19, window_bounds = array<i64: 1, 64>}, {pipeline_mode = #tpu.pipeline_mode<synchronous>, transform_indices = @transform_20, window_bounds = array<i64: 64, 32>}, {pipeline_mode = #tpu.pipeline_mode<synchronous>, transform_indices = @transform_21, window_bounds = array<i64: 1, 32>}, {transform_indices = @transform_22, window_bounds = array<i64: 1, 8, 32>}]} {
    %c0 = arith.constant 0 : index
    %c0_0 = arith.constant 0 : index
    %c0_1 = arith.constant 0 : index
    %c0_2 = arith.constant 0 : index
    %0 = vector.load %arg1[%c0, %c0_0, %c0_1, %c0_2] : memref<1x4x8x8xf32, #tpu.memory_space<vmem>>, vector<1x4x8x8xf32>
    %1 = vector.shape_cast %0 : vector<1x4x8x8xf32> to vector<4x8x8xf32>
    %c0_3 = arith.constant 0 : index
    %c0_4 = arith.constant 0 : index
    %c0_5 = arith.constant 0 : index
    %c0_6 = arith.constant 0 : index
    %2 = vector.load %arg2[%c0_3, %c0_4, %c0_5, %c0_6] : memref<1x4x8x8xf32, #tpu.memory_space<vmem>>, vector<1x4x8x8xf32>
    %3 = vector.shape_cast %2 : vector<1x4x8x8xf32> to vector<4x8x8xf32>
    %c0_7 = arith.constant 0 : index
    %c0_8 = arith.constant 0 : index
    %c0_9 = arith.constant 0 : index
    %c0_10 = arith.constant 0 : index
    %4 = vector.load %arg3[%c0_7, %c0_8, %c0_9, %c0_10] : memref<1x4x8x8xf32, #tpu.memory_space<vmem>>, vector<1x4x8x8xf32>
    %5 = vector.shape_cast %4 : vector<1x4x8x8xf32> to vector<4x8x8xf32>
    %c0_11 = arith.constant 0 : index
    %c0_12 = arith.constant 0 : index
    %c0_13 = arith.constant 0 : index
    %6 = vector.load %arg4[%c0_11, %c0_12, %c0_13] : memref<1x8x32xf32, #tpu.memory_space<vmem>>, vector<1x8x32xf32>
    %7 = vector.shape_cast %6 : vector<1x8x32xf32> to vector<8x32xf32>
    %c0_14 = arith.constant 0 : index
    %c0_15 = arith.constant 0 : index
    %8 = vector.load %arg5[%c0_14, %c0_15] : memref<8x8xf32, #tpu.memory_space<vmem>>, vector<8x8xf32>
    %c0_16 = arith.constant 0 : index
    %c0_17 = arith.constant 0 : index
    %9 = vector.load %arg6[%c0_16, %c0_17] : memref<1x8xf32, #tpu.memory_space<vmem>>, vector<1x8xf32>
    %c0_18 = arith.constant 0 : index
    %c0_19 = arith.constant 0 : index
    %10 = vector.load %arg7[%c0_18, %c0_19] : memref<8x8xf32, #tpu.memory_space<vmem>>, vector<8x8xf32>
    %c0_20 = arith.constant 0 : index
    %c0_21 = arith.constant 0 : index
    %11 = vector.load %arg8[%c0_20, %c0_21] : memref<1x8xf32, #tpu.memory_space<vmem>>, vector<1x8xf32>
    %c0_22 = arith.constant 0 : index
    %c0_23 = arith.constant 0 : index
    %12 = vector.load %arg9[%c0_22, %c0_23] : memref<8x8xf32, #tpu.memory_space<vmem>>, vector<8x8xf32>
    %c0_24 = arith.constant 0 : index
    %c0_25 = arith.constant 0 : index
    %13 = vector.load %arg10[%c0_24, %c0_25] : memref<1x8xf32, #tpu.memory_space<vmem>>, vector<1x8xf32>
    %c0_26 = arith.constant 0 : index
    %c0_27 = arith.constant 0 : index
    %c0_28 = arith.constant 0 : index
    %14 = vector.load %arg11[%c0_26, %c0_27, %c0_28] : memref<4x8x32xf32, #tpu.memory_space<vmem>>, vector<4x8x32xf32>
    %c0_29 = arith.constant 0 : index
    %c0_30 = arith.constant 0 : index
    %15 = vector.load %arg12[%c0_29, %c0_30] : memref<1x32xf32, #tpu.memory_space<vmem>>, vector<1x32xf32>
    %c0_31 = arith.constant 0 : index
    %c0_32 = arith.constant 0 : index
    %16 = vector.load %arg13[%c0_31, %c0_32] : memref<1x32xf32, #tpu.memory_space<vmem>>, vector<1x32xf32>
    %c0_33 = arith.constant 0 : index
    %c0_34 = arith.constant 0 : index
    %17 = vector.load %arg14[%c0_33, %c0_34] : memref<1x32xf32, #tpu.memory_space<vmem>>, vector<1x32xf32>
    %c0_35 = arith.constant 0 : index
    %c0_36 = arith.constant 0 : index
    %18 = vector.load %arg15[%c0_35, %c0_36] : memref<1x32xf32, #tpu.memory_space<vmem>>, vector<1x32xf32>
    %c0_37 = arith.constant 0 : index
    %c0_38 = arith.constant 0 : index
    %19 = vector.load %arg16[%c0_37, %c0_38] : memref<1x32xf32, #tpu.memory_space<vmem>>, vector<1x32xf32>
    %c0_39 = arith.constant 0 : index
    %c0_40 = arith.constant 0 : index
    %20 = vector.load %arg17[%c0_39, %c0_40] : memref<32x64xf32, #tpu.memory_space<vmem>>, vector<32x64xf32>
    %c0_41 = arith.constant 0 : index
    %c0_42 = arith.constant 0 : index
    %21 = vector.load %arg18[%c0_41, %c0_42] : memref<1x64xf32, #tpu.memory_space<vmem>>, vector<1x64xf32>
    %c0_43 = arith.constant 0 : index
    %c0_44 = arith.constant 0 : index
    %22 = vector.load %arg19[%c0_43, %c0_44] : memref<64x64xf32, #tpu.memory_space<vmem>>, vector<64x64xf32>
    %c0_45 = arith.constant 0 : index
    %c0_46 = arith.constant 0 : index
    %23 = vector.load %arg20[%c0_45, %c0_46] : memref<1x64xf32, #tpu.memory_space<vmem>>, vector<1x64xf32>
    %c0_47 = arith.constant 0 : index
    %c0_48 = arith.constant 0 : index
    %24 = vector.load %arg21[%c0_47, %c0_48] : memref<64x32xf32, #tpu.memory_space<vmem>>, vector<64x32xf32>
    %c0_49 = arith.constant 0 : index
    %c0_50 = arith.constant 0 : index
    %25 = vector.load %arg22[%c0_49, %c0_50] : memref<1x32xf32, #tpu.memory_space<vmem>>, vector<1x32xf32>
    %26 = vector.shape_cast %3 : vector<4x8x8xf32> to vector<32x8xf32>
    %cst = arith.constant dense<0.000000e+00> : vector<32x8xf32>
    %27 = tpu.matmul %26, %8, %cst {dimension_numbers = #tpu.dot_dimension_numbers<[1], [0], [0], [1], [0, 0, 1, 1], [], []>} : vector<32x8xf32>, vector<8x8xf32>, vector<32x8xf32> -> vector<32x8xf32>
    %28 = vector.broadcast %9 : vector<1x8xf32> to vector<32x8xf32>
    %29 = arith.addf %27, %28 : vector<32x8xf32>
    %30 = vector.shape_cast %29 : vector<32x8xf32> to vector<4x8x8xf32>
    %31 = vector.shape_cast %1 : vector<4x8x8xf32> to vector<32x8xf32>
    %cst_51 = arith.constant dense<0.000000e+00> : vector<32x8xf32>
    %32 = tpu.matmul %31, %10, %cst_51 {dimension_numbers = #tpu.dot_dimension_numbers<[1], [0], [0], [1], [0, 0, 1, 1], [], []>} : vector<32x8xf32>, vector<8x8xf32>, vector<32x8xf32> -> vector<32x8xf32>
    %33 = vector.broadcast %11 : vector<1x8xf32> to vector<32x8xf32>
    %34 = arith.addf %32, %33 : vector<32x8xf32>
    %35 = vector.shape_cast %34 : vector<32x8xf32> to vector<4x8x8xf32>
    %36 = vector.shape_cast %5 : vector<4x8x8xf32> to vector<32x8xf32>
    %cst_52 = arith.constant dense<0.000000e+00> : vector<32x8xf32>
    %37 = tpu.matmul %36, %12, %cst_52 {dimension_numbers = #tpu.dot_dimension_numbers<[1], [0], [0], [1], [0, 0, 1, 1], [], []>} : vector<32x8xf32>, vector<8x8xf32>, vector<32x8xf32> -> vector<32x8xf32>
    %38 = vector.broadcast %13 : vector<1x8xf32> to vector<32x8xf32>
    %39 = arith.addf %37, %38 : vector<32x8xf32>
    %40 = vector.shape_cast %39 : vector<32x8xf32> to vector<4x8x8xf32>
    "tpu.trace_start"() <{level = 10 : i32, message = "hqd,hkd->hqk"}> : () -> ()
    %cst_53 = arith.constant dense<0.000000e+00> : vector<4x8x8xf32>
    %41 = tpu.matmul %30, %35, %cst_53 {dimension_numbers = #tpu.dot_dimension_numbers<[2], [2], [1], [1], [0, 0, 0, 1, 1, 1], [0], [0]>} : vector<4x8x8xf32>, vector<4x8x8xf32>, vector<4x8x8xf32> -> vector<4x8x8xf32>
    "tpu.trace_stop"() : () -> ()
    %cst_54 = arith.constant 0.353553385 : f32
    %42 = vector.broadcast %cst_54 : f32 to vector<4x8x8xf32>
    %43 = arith.mulf %41, %42 : vector<4x8x8xf32>
    %cst_55 = arith.constant dense<0xFF800000> : vector<4x8xf32>
    %44 = vector.multi_reduction <maximumf>, %43, %cst_55 [2] : vector<4x8x8xf32> to vector<4x8xf32>
    %45 = vector.shape_cast %44 : vector<4x8xf32> to vector<4x8x1xf32>
    %46 = vector.broadcast %45 : vector<4x8x1xf32> to vector<4x8x8xf32>
    %47 = arith.subf %43, %46 : vector<4x8x8xf32>
    %48 = math.exp %47 : vector<4x8x8xf32>
    %cst_56 = arith.constant dense<0.000000e+00> : vector<4x8xf32>
    %49 = vector.multi_reduction <add>, %48, %cst_56 [2] : vector<4x8x8xf32> to vector<4x8xf32>
    %50 = vector.shape_cast %49 : vector<4x8xf32> to vector<4x8x1xf32>
    %51 = tpu.reciprocal %50 : vector<4x8x1xf32> -> vector<4x8x1xf32>
    %52 = vector.broadcast %51 : vector<4x8x1xf32> to vector<4x8x8xf32>
    %53 = arith.mulf %48, %52 : vector<4x8x8xf32>
    "tpu.trace_start"() <{level = 10 : i32, message = "hqk,hkd->hqd"}> : () -> ()
    %cst_57 = arith.constant dense<0.000000e+00> : vector<4x8x8xf32>
    %54 = tpu.matmul %53, %40, %cst_57 {dimension_numbers = #tpu.dot_dimension_numbers<[2], [1], [1], [2], [0, 0, 0, 1, 1, 2], [0], [0]>} : vector<4x8x8xf32>, vector<4x8x8xf32>, vector<4x8x8xf32> -> vector<4x8x8xf32>
    "tpu.trace_stop"() : () -> ()
    %55 = vector.extract_strided_slice %54 {offsets = [0, 0, 0], sizes = [1, 8, 8], strides = [1, 1, 1]} : vector<4x8x8xf32> to vector<1x8x8xf32>
    %56 = vector.shape_cast %55 : vector<1x8x8xf32> to vector<8x8xf32>
    %57 = vector.extract_strided_slice %14 {offsets = [0, 0, 0], sizes = [1, 8, 32], strides = [1, 1, 1]} : vector<4x8x32xf32> to vector<1x8x32xf32>
    %58 = vector.shape_cast %57 : vector<1x8x32xf32> to vector<8x32xf32>
    %cst_58 = arith.constant dense<0.000000e+00> : vector<8x32xf32>
    %59 = tpu.matmul %56, %58, %cst_58 {dimension_numbers = #tpu.dot_dimension_numbers<[1], [0], [0], [1], [0, 0, 1, 1], [], []>} : vector<8x8xf32>, vector<8x32xf32>, vector<8x32xf32> -> vector<8x32xf32>
    %60 = vector.extract_strided_slice %54 {offsets = [1, 0, 0], sizes = [1, 8, 8], strides = [1, 1, 1]} : vector<4x8x8xf32> to vector<1x8x8xf32>
    %61 = vector.shape_cast %60 : vector<1x8x8xf32> to vector<8x8xf32>
    %62 = vector.extract_strided_slice %14 {offsets = [1, 0, 0], sizes = [1, 8, 32], strides = [1, 1, 1]} : vector<4x8x32xf32> to vector<1x8x32xf32>
    %63 = vector.shape_cast %62 : vector<1x8x32xf32> to vector<8x32xf32>
    %cst_59 = arith.constant dense<0.000000e+00> : vector<8x32xf32>
    %64 = tpu.matmul %61, %63, %cst_59 {dimension_numbers = #tpu.dot_dimension_numbers<[1], [0], [0], [1], [0, 0, 1, 1], [], []>} : vector<8x8xf32>, vector<8x32xf32>, vector<8x32xf32> -> vector<8x32xf32>
    %65 = arith.addf %59, %64 : vector<8x32xf32>
    %66 = vector.extract_strided_slice %54 {offsets = [2, 0, 0], sizes = [1, 8, 8], strides = [1, 1, 1]} : vector<4x8x8xf32> to vector<1x8x8xf32>
    %67 = vector.shape_cast %66 : vector<1x8x8xf32> to vector<8x8xf32>
    %68 = vector.extract_strided_slice %14 {offsets = [2, 0, 0], sizes = [1, 8, 32], strides = [1, 1, 1]} : vector<4x8x32xf32> to vector<1x8x32xf32>
    %69 = vector.shape_cast %68 : vector<1x8x32xf32> to vector<8x32xf32>
    %cst_60 = arith.constant dense<0.000000e+00> : vector<8x32xf32>
    %70 = tpu.matmul %67, %69, %cst_60 {dimension_numbers = #tpu.dot_dimension_numbers<[1], [0], [0], [1], [0, 0, 1, 1], [], []>} : vector<8x8xf32>, vector<8x32xf32>, vector<8x32xf32> -> vector<8x32xf32>
    %71 = arith.addf %65, %70 : vector<8x32xf32>
    %72 = vector.extract_strided_slice %54 {offsets = [3, 0, 0], sizes = [1, 8, 8], strides = [1, 1, 1]} : vector<4x8x8xf32> to vector<1x8x8xf32>
    %73 = vector.shape_cast %72 : vector<1x8x8xf32> to vector<8x8xf32>
    %74 = vector.extract_strided_slice %14 {offsets = [3, 0, 0], sizes = [1, 8, 32], strides = [1, 1, 1]} : vector<4x8x32xf32> to vector<1x8x32xf32>
    %75 = vector.shape_cast %74 : vector<1x8x32xf32> to vector<8x32xf32>
    %cst_61 = arith.constant dense<0.000000e+00> : vector<8x32xf32>
    %76 = tpu.matmul %73, %75, %cst_61 {dimension_numbers = #tpu.dot_dimension_numbers<[1], [0], [0], [1], [0, 0, 1, 1], [], []>} : vector<8x8xf32>, vector<8x32xf32>, vector<8x32xf32> -> vector<8x32xf32>
    %77 = arith.addf %71, %76 : vector<8x32xf32>
    %78 = vector.broadcast %15 : vector<1x32xf32> to vector<8x32xf32>
    %79 = arith.addf %77, %78 : vector<8x32xf32>
    %80 = arith.addf %79, %7 : vector<8x32xf32>
    %cst_62 = arith.constant dense<0.000000e+00> : vector<8xf32>
    %81 = vector.multi_reduction <add>, %80, %cst_62 [1] : vector<8x32xf32> to vector<8xf32>
    %82 = vector.shape_cast %81 : vector<8xf32> to vector<8x1xf32>
    %cst_63 = arith.constant 3.200000e+01 : f32
    %83 = vector.broadcast %cst_63 : f32 to vector<8x1xf32>
    %84 = arith.divf %82, %83 : vector<8x1xf32>
    %85 = vector.broadcast %84 : vector<8x1xf32> to vector<8x32xf32>
    %86 = arith.subf %80, %85 : vector<8x32xf32>
    %87 = arith.mulf %86, %86 : vector<8x32xf32>
    %cst_64 = arith.constant dense<0.000000e+00> : vector<8xf32>
    %88 = vector.multi_reduction <add>, %87, %cst_64 [1] : vector<8x32xf32> to vector<8xf32>
    %89 = vector.shape_cast %88 : vector<8xf32> to vector<8x1xf32>
    %cst_65 = arith.constant 3.200000e+01 : f32
    %90 = vector.broadcast %cst_65 : f32 to vector<8x1xf32>
    %91 = arith.divf %89, %90 : vector<8x1xf32>
    %92 = vector.broadcast %84 : vector<8x1xf32> to vector<8x32xf32>
    %93 = arith.subf %80, %92 : vector<8x32xf32>
    %cst_66 = arith.constant 9.99999974E-6 : f32
    %94 = vector.broadcast %cst_66 : f32 to vector<8x1xf32>
    %95 = arith.addf %91, %94 : vector<8x1xf32>
    %96 = math.rsqrt %95 : vector<8x1xf32>
    %97 = vector.broadcast %96 : vector<8x1xf32> to vector<8x32xf32>
    %98 = arith.mulf %93, %97 : vector<8x32xf32>
    %99 = vector.broadcast %16 : vector<1x32xf32> to vector<8x32xf32>
    %100 = arith.mulf %98, %99 : vector<8x32xf32>
    %101 = vector.broadcast %17 : vector<1x32xf32> to vector<8x32xf32>
    %102 = arith.addf %100, %101 : vector<8x32xf32>
    %cst_67 = arith.constant dense<0.000000e+00> : vector<8x64xf32>
    %103 = tpu.matmul %102, %20, %cst_67 {dimension_numbers = #tpu.dot_dimension_numbers<[1], [0], [0], [1], [0, 0, 1, 1], [], []>} : vector<8x32xf32>, vector<32x64xf32>, vector<8x64xf32> -> vector<8x64xf32>
    %104 = vector.broadcast %21 : vector<1x64xf32> to vector<8x64xf32>
    %105 = arith.addf %103, %104 : vector<8x64xf32>
    %cst_68 = arith.constant 0.000000e+00 : f32
    %106 = vector.broadcast %cst_68 : f32 to vector<8x64xf32>
    %107 = arith.maximumf %105, %106 : vector<8x64xf32>
    %cst_69 = arith.constant dense<0.000000e+00> : vector<8x64xf32>
    %108 = tpu.matmul %107, %22, %cst_69 {dimension_numbers = #tpu.dot_dimension_numbers<[1], [0], [0], [1], [0, 0, 1, 1], [], []>} : vector<8x64xf32>, vector<64x64xf32>, vector<8x64xf32> -> vector<8x64xf32>
    %109 = vector.broadcast %23 : vector<1x64xf32> to vector<8x64xf32>
    %110 = arith.addf %108, %109 : vector<8x64xf32>
    %cst_70 = arith.constant 0.000000e+00 : f32
    %111 = vector.broadcast %cst_70 : f32 to vector<8x64xf32>
    %112 = arith.maximumf %110, %111 : vector<8x64xf32>
    %cst_71 = arith.constant dense<0.000000e+00> : vector<8x32xf32>
    %113 = tpu.matmul %112, %24, %cst_71 {dimension_numbers = #tpu.dot_dimension_numbers<[1], [0], [0], [1], [0, 0, 1, 1], [], []>} : vector<8x64xf32>, vector<64x32xf32>, vector<8x32xf32> -> vector<8x32xf32>
    %114 = vector.broadcast %25 : vector<1x32xf32> to vector<8x32xf32>
    %115 = arith.addf %113, %114 : vector<8x32xf32>
    %116 = arith.addf %115, %102 : vector<8x32xf32>
    %cst_72 = arith.constant dense<0.000000e+00> : vector<8xf32>
    %117 = vector.multi_reduction <add>, %116, %cst_72 [1] : vector<8x32xf32> to vector<8xf32>
    %118 = vector.shape_cast %117 : vector<8xf32> to vector<8x1xf32>
    %cst_73 = arith.constant 3.200000e+01 : f32
    %119 = vector.broadcast %cst_73 : f32 to vector<8x1xf32>
    %120 = arith.divf %118, %119 : vector<8x1xf32>
    %121 = vector.broadcast %120 : vector<8x1xf32> to vector<8x32xf32>
    %122 = arith.subf %116, %121 : vector<8x32xf32>
    %123 = arith.mulf %122, %122 : vector<8x32xf32>
    %cst_74 = arith.constant dense<0.000000e+00> : vector<8xf32>
    %124 = vector.multi_reduction <add>, %123, %cst_74 [1] : vector<8x32xf32> to vector<8xf32>
    %125 = vector.shape_cast %124 : vector<8xf32> to vector<8x1xf32>
    %cst_75 = arith.constant 3.200000e+01 : f32
    %126 = vector.broadcast %cst_75 : f32 to vector<8x1xf32>
    %127 = arith.divf %125, %126 : vector<8x1xf32>
    %128 = vector.broadcast %120 : vector<8x1xf32> to vector<8x32xf32>
    %129 = arith.subf %116, %128 : vector<8x32xf32>
    %cst_76 = arith.constant 9.99999974E-6 : f32
    %130 = vector.broadcast %cst_76 : f32 to vector<8x1xf32>
    %131 = arith.addf %127, %130 : vector<8x1xf32>
    %132 = math.rsqrt %131 : vector<8x1xf32>
    %133 = vector.broadcast %132 : vector<8x1xf32> to vector<8x32xf32>
    %134 = arith.mulf %129, %133 : vector<8x32xf32>
    %135 = vector.broadcast %18 : vector<1x32xf32> to vector<8x32xf32>
    %136 = arith.mulf %134, %135 : vector<8x32xf32>
    %137 = vector.broadcast %19 : vector<1x32xf32> to vector<8x32xf32>
    %138 = arith.addf %136, %137 : vector<8x32xf32>
    %c0_77 = arith.constant 0 : index
    %c0_78 = arith.constant 0 : index
    %c0_79 = arith.constant 0 : index
    %139 = vector.load %arg23[%c0_77, %c0_78, %c0_79] : memref<1x8x32xf32, #tpu.memory_space<vmem>>, vector<1x8x32xf32>
    %140 = vector.shape_cast %139 : vector<1x8x32xf32> to vector<8x32xf32>
    %141 = vector.shape_cast %138 : vector<8x32xf32> to vector<1x8x32xf32>
    tpu.vector_store %arg23[%c0_77, %c0_78, %c0_79], %141 {strides = array<i32>} : memref<1x8x32xf32, #tpu.memory_space<vmem>>, vector<1x8x32xf32>,
    return
  }
  func.func @transform_0(%arg0: i32) -> (i32, i32, i32, i32) {
    %c0_i32 = arith.constant 0 : i32
    %c0_i32_0 = arith.constant 0 : i32
    %c0_i32_1 = arith.constant 0 : i32
    %c0_i32_2 = arith.constant 0 : i32
    return %arg0, %c0_i32, %c0_i32_0, %c0_i32_1 : i32, i32, i32, i32
  }
  func.func @transform_1(%arg0: i32) -> (i32, i32, i32, i32) {
    %c0_i32 = arith.constant 0 : i32
    %c0_i32_0 = arith.constant 0 : i32
    %c0_i32_1 = arith.constant 0 : i32
    %c0_i32_2 = arith.constant 0 : i32
    return %arg0, %c0_i32, %c0_i32_0, %c0_i32_1 : i32, i32, i32, i32
  }
  func.func @transform_2(%arg0: i32) -> (i32, i32, i32, i32) {
    %c0_i32 = arith.constant 0 : i32
    %c0_i32_0 = arith.constant 0 : i32
    %c0_i32_1 = arith.constant 0 : i32
    %c0_i32_2 = arith.constant 0 : i32
    return %arg0, %c0_i32, %c0_i32_0, %c0_i32_1 : i32, i32, i32, i32
  }
  func.func @transform_3(%arg0: i32) -> (i32, i32, i32) {
    %c0_i32 = arith.constant 0 : i32
    %c0_i32_0 = arith.constant 0 : i32
    %c0_i32_1 = arith.constant 0 : i32
    return %arg0, %c0_i32, %c0_i32_0 : i32, i32, i32
  }
  func.func @transform_4(%arg0: i32) -> (i32, i32) {
    %c0_i32 = arith.constant 0 : i32
    %c0_i32_0 = arith.constant 0 : i32
    %c0_i32_1 = arith.constant 0 : i32
    return %c0_i32, %c0_i32_0 : i32, i32
  }
  func.func @transform_5(%arg0: i32) -> (i32, i32) {
    %c0_i32 = arith.constant 0 : i32
    %c0_i32_0 = arith.constant 0 : i32
    %c0_i32_1 = arith.constant 0 : i32
    return %c0_i32, %c0_i32_0 : i32, i32
  }
  func.func @transform_6(%arg0: i32) -> (i32, i32) {
    %c0_i32 = arith.constant 0 : i32
    %c0_i32_0 = arith.constant 0 : i32
    %c0_i32_1 = arith.constant 0 : i32
    return %c0_i32, %c0_i32_0 : i32, i32
  }
  func.func @transform_7(%arg0: i32) -> (i32, i32) {
    %c0_i32 = arith.constant 0 : i32
    %c0_i32_0 = arith.constant 0 : i32
    %c0_i32_1 = arith.constant 0 : i32
    return %c0_i32, %c0_i32_0 : i32, i32
  }
  func.func @transform_8(%arg0: i32) -> (i32, i32) {
    %c0_i32 = arith.constant 0 : i32
    %c0_i32_0 = arith.constant 0 : i32
    %c0_i32_1 = arith.constant 0 : i32
    return %c0_i32, %c0_i32_0 : i32, i32
  }
  func.func @transform_9(%arg0: i32) -> (i32, i32) {
    %c0_i32 = arith.constant 0 : i32
    %c0_i32_0 = arith.constant 0 : i32
    %c0_i32_1 = arith.constant 0 : i32
    return %c0_i32, %c0_i32_0 : i32, i32
  }
  func.func @transform_10(%arg0: i32) -> (i32, i32, i32) {
    %c0_i32 = arith.constant 0 : i32
    %c0_i32_0 = arith.constant 0 : i32
    %c0_i32_1 = arith.constant 0 : i32
    %c0_i32_2 = arith.constant 0 : i32
    return %c0_i32, %c0_i32_0, %c0_i32_1 : i32, i32, i32
  }
  func.func @transform_11(%arg0: i32) -> (i32, i32) {
    %c0_i32 = arith.constant 0 : i32
    %c0_i32_0 = arith.constant 0 : i32
    %c0_i32_1 = arith.constant 0 : i32
    return %c0_i32, %c0_i32_0 : i32, i32
  }
  func.func @transform_12(%arg0: i32) -> (i32, i32) {
    %c0_i32 = arith.constant 0 : i32
    %c0_i32_0 = arith.constant 0 : i32
    %c0_i32_1 = arith.constant 0 : i32
    return %c0_i32, %c0_i32_0 : i32, i32
  }
  func.func @transform_13(%arg0: i32) -> (i32, i32) {
    %c0_i32 = arith.constant 0 : i32
    %c0_i32_0 = arith.constant 0 : i32
    %c0_i32_1 = arith.constant 0 : i32
    return %c0_i32, %c0_i32_0 : i32, i32
  }
  func.func @transform_14(%arg0: i32) -> (i32, i32) {
    %c0_i32 = arith.constant 0 : i32
    %c0_i32_0 = arith.constant 0 : i32
    %c0_i32_1 = arith.constant 0 : i32
    return %c0_i32, %c0_i32_0 : i32, i32
  }
  func.func @transform_15(%arg0: i32) -> (i32, i32) {
    %c0_i32 = arith.constant 0 : i32
    %c0_i32_0 = arith.constant 0 : i32
    %c0_i32_1 = arith.constant 0 : i32
    return %c0_i32, %c0_i32_0 : i32, i32
  }
  func.func @transform_16(%arg0: i32) -> (i32, i32) {
    %c0_i32 = arith.constant 0 : i32
    %c0_i32_0 = arith.constant 0 : i32
    %c0_i32_1 = arith.constant 0 : i32
    return %c0_i32, %c0_i32_0 : i32, i32
  }
  func.func @transform_17(%arg0: i32) -> (i32, i32) {
    %c0_i32 = arith.constant 0 : i32
    %c0_i32_0 = arith.constant 0 : i32
    %c0_i32_1 = arith.constant 0 : i32
    return %c0_i32, %c0_i32_0 : i32, i32
  }
  func.func @transform_18(%arg0: i32) -> (i32, i32) {
    %c0_i32 = arith.constant 0 : i32
    %c0_i32_0 = arith.constant 0 : i32
    %c0_i32_1 = arith.constant 0 : i32
    return %c0_i32, %c0_i32_0 : i32, i32
  }
  func.func @transform_19(%arg0: i32) -> (i32, i32) {
    %c0_i32 = arith.constant 0 : i32
    %c0_i32_0 = arith.constant 0 : i32
    %c0_i32_1 = arith.constant 0 : i32
    return %c0_i32, %c0_i32_0 : i32, i32
  }
  func.func @transform_20(%arg0: i32) -> (i32, i32) {
    %c0_i32 = arith.constant 0 : i32
    %c0_i32_0 = arith.constant 0 : i32
    %c0_i32_1 = arith.constant 0 : i32
    return %c0_i32, %c0_i32_0 : i32, i32
  }
  func.func @transform_21(%arg0: i32) -> (i32, i32) {
    %c0_i32 = arith.constant 0 : i32
    %c0_i32_0 = arith.constant 0 : i32
    %c0_i32_1 = arith.constant 0 : i32
    return %c0_i32, %c0_i32_0 : i32, i32
  }
  func.func @transform_22(%arg0: i32) -> (i32, i32, i32) {
    %c0_i32 = arith.constant 0 : i32
    %c0_i32_0 = arith.constant 0 : i32
    %c0_i32_1 = arith.constant 0 : i32
    return %arg0, %c0_i32, %c0_i32_0 : i32, i32, i32
  }
}

</mosaic_0001>

<bundles_post_ra>
// kernel: transf_block.1
= control target key start
LH: loop header
LB: loop body
LE: loop exit
PB: predicated region body
PF: predicated region fallthrough
CT: control target
= control target key end

     0   :  { %s3281_s0 = inlined_call_operand.vmem [shape: f32[2,4,8,8], index: 0, kind: input, shape index: {}]   ;;  %s3282_s1 = inlined_call_operand.vmem [shape: f32[2,4,8,8], index: 1, kind: input, shape index: {}]   ;;  %s3283_s2 = inlined_call_operand.vmem [shape: f32[2,4,8,8], index: 2, kind: input, shape index: {}]   ;;  %s3284_s3 = inlined_call_operand.vmem [shape: f32[2,8,32], index: 3, kind: input, shape index: {}]   ;;  %s3285_s4 = inlined_call_operand.vmem [shape: f32[8,8], index: 4, kind: input, shape index: {}]   ;;  %s3286_s5 = inlined_call_operand.vmem [shape: f32[1,8], index: 5, kind: input, shape index: {}]   ;;  %s3287_s6 = inlined_call_operand.vmem [shape: f32[8,8], index: 6, kind: input, shape index: {}]   ;;  %s3288_s7 = inlined_call_operand.vmem [shape: f32[1,8], index: 7, kind: input, shape index: {}]   ;;  %s3289_s8 = inlined_call_operand.vmem [shape: f32[8,8], index: 8, kind: input, shape index: {}]   ;;  %s3290_s9 = inlined_call_operand.vmem [shape: f32[1,8], index: 9, kind: input, shape index: {}]   ;;  %s3291_s10 = inlined_call_operand.vmem [shape: f32[4,8,32], index: 10, kind: input, shape index: {}]   ;;  %s3292_s11 = inlined_call_operand.vmem [shape: f32[1,32], index: 11, kind: input, shape index: {}]   ;;  %s3293_s12 = inlined_call_operand.vmem [shape: f32[1,32], index: 12, kind: input, shape index: {}]   ;;  %s3294_s13 = inlined_call_operand.vmem [shape: f32[1,32], index: 13, kind: input, shape index: {}]   ;;  %s3295_s14 = inlined_call_operand.vmem [shape: f32[1,32], index: 14, kind: input, shape index: {}]   ;;  %s3296_s15 = inlined_call_operand.vmem [shape: f32[1,32], index: 15, kind: input, shape index: {}]   ;;  %s3297_s16 = inlined_call_operand.vmem [shape: f32[32,64], index: 16, kind: input, shape index: {}]   ;;  %s3298_s17 = inlined_call_operand.vmem [shape: f32[1,64], index: 17, kind: input, shape index: {}]   ;;  %s3299_s18 = inlined_call_operand.vmem [shape: f32[64,64], index: 18, kind: input, shape index: {}]   ;;  %s3300_s19 = inlined_call_operand.vmem [shape: f32[1,64], index: 19, kind: input, shape index: {}]   ;;  %s3301_s20 = inlined_call_operand.vmem [shape: f32[64,32], index: 20, kind: input, shape index: {}]   ;;  %s3302_s21 = inlined_call_operand.vmem [shape: f32[1,32], index: 21, kind: input, shape index: {}]   ;;  %s3303_s22 = inlined_call_operand.hbm [shape: f32[2,8,32], index: 22, kind: output, shape index: {}]  }
   0x1   :  { %3311 = sst [smem:[#allocation11_spill]] %s3281_s0 }
   0x2   :  { %3312 = sst [smem:[#allocation12_spill]] %s3282_s1 }
   0x3   :  { %3313 = sst [smem:[#allocation13_spill]] %s3283_s2 }
   0x4   :  { %3314 = sst [smem:[#allocation14_spill]] %s3284_s3 }
   0x5   :  { %3315 = sst [smem:[#allocation15_spill]] %s3285_s4 }
   0x6   :  { %3316 = sst [smem:[#allocation16_spill]] %s3286_s5 }
   0x7   :  { %3317 = sst [smem:[#allocation17_spill]] %s3287_s6 }
   0x8   :  { %3318 = sst [smem:[#allocation18_spill]] %s3288_s7 }
   0x9   :  { %3319 = sst [smem:[#allocation19_spill]] %s3289_s8 }
   0xa   :  { %3320 = sst [smem:[#allocation20_spill]] %s3303_s22 }
   0xb   :  { %27 = vsyncpa [#allocation3], 0 }
   0xc   :  { %29 = vsyncpa [#allocation3 + $0x1], 0  ;;  %s2952_s3 = smov 0   ;;  %s2954_s28 = smov 0  }
   0xd   :  { %s2956_s29 = smov 0   ;;  %s2958_s30 = smov 0  }
   0xe LB: > { %3321 = sst [smem:[#allocation5_spill]] %s2820_s3  ;;  %s2973_s4 = sadd.s32 4294967295, %s2832_s30   ;;  %s2832_s30 = sphi %s2958_s30, %s3343_s30   ;;  %s2828_s29 = sphi %s2956_s29, %s3345_s29   ;;  %s2824_s28 = sphi %s2954_s28, %s3347_s28   ;;  %s2820_s3 = sphi %s2952_s3, %s3346_s3  }
   0xf   : > { %3322 = sst [smem:[#allocation6_spill]] %s2828_s29  ;;  %s2453_s0 = sadd.s32 4294967294, %s2832_s30  }
  0x10   : > { %3323 = sst [smem:[#allocation7_spill]] %s2832_s30  ;;  %s2977_s23 = sadd.s32 1, %s2832_s30  }
  0x11   : > { %3324 = sst [smem:[#allocation8_spill]] %s2977_s23  ;;  %s524_s1 = sadd.s32 1, %s2828_s29 }
  0x12   : > { %s521_s5 = ssub.s32 %s2832_s30, %s2977_s23  ;;  %p534_p0 = scmp.ne.s32.totalorder %s2828_s29, %s2824_s28 }
  0x13   : > { %p522_p1 = scmp.eq.s32.totalorder %s521_s5, 0  ;;  %p535_p2 = scmp.eq.s32.totalorder %s2973_s4, 1 }
  0x14   : > { %p540_p3 = scmp.ne.s32.totalorder %s2824_s28, %s2820_s3  ;;  %p541_p4 = scmp.eq.s32.totalorder %s2453_s0, 1 }
  0x15   : > { %s2988_s24 = scalar_select %p522_p1, %s2828_s29, %s524_s1  }
  0x16   : > { %p2990_p5 = por %p535_p2, %p534_p0  ;;  %p2994_p6 = por %p541_p4, %p540_p3 }
  0x17   : > { %3325 = sst [smem:[#allocation9_spill]] %s2988_s24  ;;  %p2456_p7 = scmp.ge.s32.totalorder %s2832_s30, 1 }
  0x18   : > { %s3327_s25 = scalar_select %p2994_p6, 1, 0 }
  0x19   : > { %p644_p8 = scmp.lt.s32.totalorder %s2832_s30, 3 }
  0x1a   : > { %3328 = sst [smem:[#allocation10_spill]] %s3327_s25 }
  0x1b   : > { %p645_p9 = pnand %p2456_p7, %p644_p8 }
  0x1c   : > { %s3329_s27 = sld [smem:[#allocation15_spill]] (!%p645_p9)  ;;  %p720_p10 = scmp.lt.s32.totalorder (!%p645_p9), %s2973_s4, 1 }
  0x1d   : > { %648 = sbr.rel (%p645_p9) target bundleno = 2374 (0x946), region = 108  ;;  %s3330_s5 = sld [smem:[#allocation17_spill]] (!%p645_p9) }
  0x1e   : > { %s3331_s2 = sld [smem:[#allocation12_spill]] (!%p645_p9)  ;;  %s717_s23 = sand.u32 (!%p645_p9), 1, %s2824_s28  }
  0x1f   : > { %s3332_s30 = sld [smem:[#allocation11_spill]] (!%p645_p9) }
  0x20   : > { %s3333_s8 = sld [smem:[#allocation19_spill]] (!%p645_p9) }
  0x21   : > { %s3334_s0 = sld [smem:[#allocation13_spill]] (!%p645_p9) }
  0x22   : > { %v752_v0 = vld [vmem:[%s3329_s27] sm:$0xff]  ;;  %s3008_s24 = scalar_select %p720_p10, %s2973_s4, 1  ;;  %vm796_vm0 = vcmask 64512   ;;  %v2834_v13 = vmov 0.0   ;;  %vm2835_vm1 = vmmov 0   ;;  %vm2046_vm2 = vcmask 261120  }
  0x23   : > { %v754_v1 = vld [vmem:[%s3330_s5] sm:$0xff]  ;;  %2709 = vmatprep.subr.mxu1 %v752_v0  ;;  %2576 = vmatprep.subr.mxu0 %v752_v0  ;;  %s3335_s7 = sld [smem:[#allocation18_spill]]  ;;  %vm2161_vm3 = vcmask 523264  }
  0x24   : > { %2710 = vmatpush3.msra.mxu1 %v752_v0  ;;  %2577 = vmatpush3.msra.mxu0 %v752_v0  ;;  %s2511_s29 = sshll.u32 %s3008_s24, 5  ;;  %v3070_v34 = vld [vmem:[%s3290_s9] ss:$0 sm:$0xff]  ;;  %s2464_s26 = sshll.u32 %s3008_s24, 3 }
  0x25   : > { %2584 = vmatprep.subr.mxu1 %v754_v1  ;;  %s729_s25 = scalar_lea.vmem %s3331_s2, %s2511_s29  ;;  %s724_s22 = scalar_lea.vmem %s3332_s30, %s2511_s29 }
  0x26   : > { %v745_v2 = vld [vmem:[%s729_s25 + $0x10] sm:$0xff]  ;;  %v746_v3 = vld [vmem:[%s729_s25 + $0x18] sm:$0xff]  ;;  %v739_v4 = vld [vmem:[%s724_s22] sm:$0xff]  ;;  %s3336_s2 = sld [smem:[#allocation16_spill]] }
  0x27   : > { %2581 = vmatprep.mubr.msk.f32.mxu1 %vm796_vm0, %v745_v2  ;;  %v743_v5 = vld [vmem:[%s729_s25] sm:$0xff]  ;;  %v744_v6 = vld [vmem:[%s729_s25 + $0x8] sm:$0xff]  ;;  %v741_v8 = vld [vmem:[%s724_s22 + $0x10] sm:$0xff]  ;;  %s734_s1 = scalar_lea.vmem %s3334_s0, %s2511_s29  ;;  %s3337_s3 = sld [smem:[#allocation14_spill]] }
  0x28   : > { %2582 = vmatmul.mubr.msk.f32.vlgmr.msra.gmra.mxu1 %vm796_vm0, %v746_v3  ;;  %2578 = vmatprep.mubr.msk.f32.mxu0 %vm796_vm0, %v743_v5  ;;  %v740_v7 = vld [vmem:[%s724_s22 + $0x8] sm:$0xff]  ;;  %v742_v9 = vld [vmem:[%s724_s22 + $0x18] sm:$0xff]  ;;  %v756_v10 = vld [vmem:[%s3333_s8] sm:$0xff]  ;;  %s2457_s25 = sshll.u32 %s717_s23, 3  ;;  %s2508_s29 = sshll.u32 %s2973_s4, 7 }
  0x29   : > { %2585 = vmatpush3.msra.mxu1 %v754_v1  ;;  %2586 = vmatprep.mubr.msk.f32.mxu1 %vm796_vm0, %v739_v4  ;;  %v747_v11 = vld [vmem:[%s734_s1] sm:$0xff]  ;;  %v748_v12 = vld [vmem:[%s734_s1 + $0x8] sm:$0xff]  ;;  %v749_v14 = vld [vmem:[%s734_s1 + $0x10] sm:$0xff]  ;;  %s719_s5 = scalar_lea.vmem [#allocation2], %s2457_s25  ;;  %s2345_s8 = scalar_lea.sflag [#allocation3], %s717_s23 }
  0x2a   : > { %2579 = vmatmul.mubr.msk.f32.vlgmr.msra.gmra.mxu0 %vm796_vm0, %v744_v6  ;;  %2592 = vmatprep.subr.mxu0 %v756_v10  ;;  %v750_v15 = vld [vmem:[%s734_s1 + $0x18] sm:$0xff]  ;;  %v2470_v20 = vld [vmem:[%s3335_s7] ss:$0 sm:$0xff]  ;;  %s2836_s0 = smov [#allocation2]  }
  0x2b   : > { %2593 = vmatpush3.msra.mxu0 %v756_v10  ;;  %2594 = vmatprep.mubr.msk.f32.mxu0 %vm796_vm0, %v747_v11  ;;  %s2776_s1 = sshll.u32 %s2836_s0, 4  ;;  %s2777_s1 = int_to_ptr.vmem [resolvable:$false] %s2776_s1 }
  0x2c   : > { %2587 = vmatmul.mubr.msk.f32.vlgmr.msra.gmra.mxu1 %vm796_vm0, %v740_v7  ;;  %2600 = vmatprep.subr.mxu1 %v2834_v13  ;;  %v2465_v25 = vld [vmem:[%s3336_s2] ss:$0 sm:$0xff]  ;;  %s2778_s4 = scalar_lea.vmem %s2777_s1, 256 }
  0x2d   : > { %2589 = vmatprep.mubr.msk.f32.mxu1 %vm796_vm0, %v741_v8  ;;  %2610 = vmatprep.subr.mxu0 %v2834_v13  ;;  %s738_s30 = scalar_lea.vmem %s3337_s3, %s2464_s26  ;;  %s2358_s26 = sshll.u32 %s719_s5, 4  ;;  %s2359_s26 = int_to_ptr.vmem [resolvable:$true] %s2358_s26 }
  0x2e   : > { %2595 = vmatmul.mubr.msk.f32.vlgmr.msra.gmra.mxu0 %vm796_vm0, %v748_v12  ;;  %s3338_s3 = sld [smem:[#allocation20_spill]]  ;;  %s2772_s24 = scalar_lea.vmem %s2359_s26, 128 }
  0x2f   : > { %2597 = vmatprep.mubr.msk.f32.mxu0 %vm796_vm0, %v749_v14  ;;  %p2773_p11 = scmp.ne.s32.totalorder %s2359_s26, %s2772_s24  ;;  %p2779_p0 = scmp.lt.s32.totalorder %s2359_s26, %s2777_s1 }
  0x30   : > { %2590 = vmatmul.mubr.msk.f32.gmra.mxu1 %vm796_vm0, %v742_v9  ;;  %p2780_p1 = scmp.lt.s32.totalorder %s2778_s4, %s2772_s24 }
  0x31   : > { %2602 = vmatprep.mubr.msk.f32.mxu1 %vm2835_vm1, %v2834_v13  ;;  %p2774_p12 = pnand %p2773_p11, %p2990_p5 }
  0x32   : > { %2598 = vmatmul.mubr.msk.f32.gmra.mxu0 %vm796_vm0, %v750_v15  ;;  %p2781_p2 = por %p2780_p1, %p2779_p0 }
  0x33   : > { %2612 = vmatprep.mubr.msk.f32.mxu0 %vm2835_vm1, %v2834_v13  ;;  %p2775_p13 = pneg %p2774_p12 }
  0x34   : > { %s3339_s7 = smov %s3338_s3 }
  0x35   : > { %p2782_p3 = pnand %p2781_p2, %p2775_p13 }
  0xe8   : > { %v2583_v16 = vpop.f32.mrf.mxu1 }
  0xe9   : > { %v891_v33 = vadd.f32 %v2583_v16, %v2465_v25 }
  0xea   : > { %v885_v17 = vpop.f32.mrf.mxu1  ;;  %v2580_v18 = vpop.f32.mrf.mxu0 }
  0xeb   : > { %v886_v30 = vadd.f32 %v2465_v25, %v885_v17  ;;  %v881_v31 = vadd.f32 %v2580_v18, %v2465_v25 }
  0xec   : > { %v2588_v19 = vpop.f32.mrf.mxu1  ;;  %v875_v23 = vpop.f32.mrf.mxu0 }
  0xed   : > { %v876_v26 = vadd.f32 %v2465_v25, %v875_v23  ;;  %v984_v28 = vadd.f32 %v2588_v19, %v2470_v20 }
  0xee   : > { %v978_v21 = vpop.f32.mrf.mxu1  ;;  %v2596_v35 = vpop.f32.mrf.mxu0 }
  0xef   : > { %v979_v22 = vadd.f32 %v2470_v20, %v978_v21  ;;  %v1087_v36 = vadd.f32 %v2596_v35, %v3070_v34 }
  0xf0   : > { %v2591_v24 = vpop.f32.mrf.mxu1  ;;  %v1081_v37 = vpop.f32.mrf.mxu0 }
  0xf1   : > { %2601 = vmatpush3.xpose.msk.msra.mxu1 %vm796_vm0, %v979_v22  ;;  %v994_v32 = vadd.f32 %v2591_v24, %v2470_v20  ;;  %v1082_v38 = vadd.f32 %v3070_v34, %v1081_v37 }
  0xf2   : > { %v988_v27 = vpop.f32.mrf.mxu1  ;;  %2605 = vmatprep.subr.mxu1 %v2834_v13  ;;  %v2599_v39 = vpop.f32.mrf.mxu0 }
  0xf3   : > { %v989_v29 = vadd.f32 %v2470_v20, %v988_v27  ;;  %v3076_v40 = vadd.f32 %v2599_v39, %v3070_v34 }
  0xf4   : > { %2603 = vmatmul.mubr.msk.f32.vlgmr.msra.gmra.mxu1 %vm796_vm0, %v876_v26  ;;  %v1091_v42 = vpop.f32.mrf.mxu0 }
  0xf5   : > { %2606 = vmatpush3.xpose.msk.msra.mxu1 %vm796_vm0, %v984_v28  ;;  %2611 = vmatpush3.xpose.msk.msra.mxu0 %vm796_vm0, %v989_v29  ;;  %v1092_v21 = vadd.f32 %v3070_v34, %v1091_v42  ;;  %v758_v28 = vld [vmem:[%s3291_s10] sm:$0xff]  ;;  %v759_v29 = vld [vmem:[%s3291_s10 + $0x8] sm:$0xff]  ;;  %v760_v34 = vld [vmem:[%s3291_s10 + $0x10] sm:$0xff] }
  0xf6   : > { %2607 = vmatprep.mubr.msk.f32.mxu1 %vm2835_vm1, %v2834_v13  ;;  %2615 = vmatprep.subr.mxu1 %v2834_v13 }
  0xf7   : > { %2620 = vmatprep.subr.mxu0 %v2834_v13 }
  0xf8   : > { %2608 = vmatmul.mubr.msk.f32.vlgmr.msra.gmra.mxu1 %vm796_vm0, %v881_v31  ;;  %2613 = vmatmul.mubr.msk.f32.vlgmr.msra.gmra.mxu0 %vm796_vm0, %v886_v30  ;;  %v761_v30 = vld [vmem:[%s3291_s10 + $0x18] sm:$0xff] }
  0xf9   : > { %2616 = vmatpush3.xpose.msk.msra.mxu1 %vm796_vm0, %v994_v32  ;;  %2617 = vmatprep.mubr.msk.f32.mxu1 %vm2835_vm1, %v2834_v13 }
  0xfa   : > { %2625 = vmatprep.subr.mxu1 %v2834_v13  ;;  %2622 = vmatprep.mubr.msk.f32.mxu0 %vm2835_vm1, %v2834_v13 }
  0xfb   : > { %2621 = vmatpush3.msra.mxu0 %v1082_v38 }
  0xfc   : > { %2618 = vmatmul.mubr.msk.f32.vlgmr.msra.gmra.mxu1 %vm796_vm0, %v891_v33  ;;  %2630 = vmatprep.subr.mxu0 %v2834_v13 }
  0xfd   : > { %2627 = vmatprep.mubr.msk.f32.mxu1 %vm2835_vm1, %v2834_v13  ;;  %2626 = vmatpush3.msra.mxu1 %v1087_v36 }
  0xfe   : > { %2635 = vmatprep.subr.mxu1 %v2834_v13 }
 0x1b4   : > { %v1172_v41 = vpop.f32.mrf.mxu1 }
 0x1b5   : > { %v1404_v43 = vmul.f32 0.35355338, %v1172_v41 }
 0x1b6   : > { %v2604_v44 = vpop.f32.mrf.mxu1 }
 0x1b7   : > { %v1408_v45 = vsel %vm796_vm0, %v1404_v43, -inf }
 0x1b8   : > { %v1324_v46 = vpop.f32.mrf.mxu0  ;;  %1409 = vmax.xlane.f32.xlu0 %v1408_v45  ;;  %v1248_v47 = vpop.f32.mrf.mxu1 }
 0x1b9   : > { %v1406_v48 = vmul.f32 0.35355338, %v1324_v46  ;;  %v1405_v49 = vmul.f32 0.35355338, %v1248_v47 }
 0x1ba   : > { %v2609_v50 = vpop.f32.mrf.mxu1  ;;  %v2614_v51 = vpop.f32.mrf.mxu0 }
 0x1bb   : > { %v1414_v52 = vsel %vm796_vm0, %v1406_v48, -inf  ;;  %v1411_v53 = vsel %vm796_vm0, %v1405_v49, -inf }
 0x1bc   : > { %1415 = vmax.xlane.f32.xlu1 %v1414_v52  ;;  %1412 = vmax.xlane.f32.xlu0 %v1411_v53  ;;  %v1400_v54 = vpop.f32.mrf.mxu1  ;;  %v751_v52 = vld [vmem:[%s738_s30] sm:$0xff]  ;;  %s2356_s30 = scalar_lea.hbm %s3338_s3, %s2508_s29 }
 0x1bd   : > { %v1407_v55 = vmul.f32 0.35355338, %v1400_v54 }
 0x1be   : > { %v2619_v56 = vpop.f32.mrf.mxu1 }
 0x1bf   : > { %v1417_v57 = vsel %vm796_vm0, %v1407_v55, -inf }
 0x1c0   : > { %1418 = vmax.xlane.f32.xlu1 %v1417_v57 }
 0x241   : > { %v1410_v58 = vpop.xlane.xlu0 %1409 }
 0x242   : > { %v1420_v59 = vsub.f32 %v1404_v43, %v1410_v58 }
 0x244   : > { %v1424_v60 = vmul.f32 1.442695, %v1420_v59 }
 0x245   : > { %v1416_v61 = vpop.xlane.xlu1 %1415  ;;  %v1413_v62 = vpop.xlane.xlu0 %1412 }
 0x246   : > { %2752 = vpow2.f32 %v1424_v60  ;;  %v1422_v63 = vsub.f32 %v1406_v48, %v1416_v61  ;;  %v1421_v0 = vsub.f32 %v1405_v49, %v1413_v62  ;;  %v2496_v48 = vld [vmem:[%s3292_s11] ss:$0 sm:$0xff]  ;;  %v770_v61 = vld [vmem:[%s3297_s16 + $0x18] sm:$0xff]  ;;  %v769_v62 = vld [vmem:[%s3297_s16 + $0x10] sm:$0xff] }
 0x248   : > { %v1428_v1 = vmul.f32 1.442695, %v1422_v63  ;;  %v1426_v2 = vmul.f32 1.442695, %v1421_v0  ;;  %v768_v63 = vld [vmem:[%s3297_s16 + $0x8] sm:$0xff]  ;;  %v767_v0 = vld [vmem:[%s3297_s16] sm:$0xff] }
 0x249   : > { %v1419_v3 = vpop.xlane.xlu1 %1418 }
 0x24a   : > { %2754 = vpow2.f32 %v1428_v1  ;;  %v1423_v4 = vsub.f32 %v1407_v55, %v1419_v3  ;;  %v779_v1 = vld [vmem:[%s3299_s18 + $0x38] sm:$0xff]  ;;  %v777_v3 = vld [vmem:[%s3299_s18 + $0x28] sm:$0xff] }
 0x24b   : > { %2756 = vpow2.f32 %v1426_v2  ;;  %v778_v2 = vld [vmem:[%s3299_s18 + $0x30] sm:$0xff] }
 0x24c   : > { %v1430_v5 = vmul.f32 1.442695, %v1423_v4  ;;  %v776_v4 = vld [vmem:[%s3299_s18 + $0x20] sm:$0xff] }
 0x24e   : > { %2758 = vpow2.f32 %v1430_v5  ;;  %v775_v5 = vld [vmem:[%s3299_s18 + $0x18] sm:$0xff] }
 0x253   : > { %v2753_v6 = vpop.eup %2752 }
 0x254   : > { %v1432_v7 = vsel %vm796_vm0, %v2753_v6, 0.0 }
 0x255   : > { %1433 = vadd.xlane.f32.xlu0 %v1432_v7 }
 0x257   : > { %v2755_v8 = vpop.eup %2754 }
 0x258   : > { %v2757_v9 = vpop.eup %2756  ;;  %v1438_v10 = vsel %vm796_vm0, %v2755_v8, 0.0 }
 0x259   : > { %1439 = vadd.xlane.f32.xlu0 %v1438_v10  ;;  %v1435_v11 = vsel %vm796_vm0, %v2757_v9, 0.0  ;;  %v2497_v10 = vld [vmem:[%s3293_s12] ss:$0 sm:$0xff] }
 0x25a   : > { %1436 = vadd.xlane.f32.xlu1 %v1435_v11 }
 0x25b   : > { %v2759_v12 = vpop.eup %2758 }
 0x25c   : > { %v1441_v14 = vsel %vm796_vm0, %v2759_v12, 0.0 }
 0x25e   : > { %1442 = vadd.xlane.f32.xlu1 %v1441_v14 }
 0x2de   : > { %v1434_v15 = vpop.xlane.xlu0 %1433 }
 0x2df   : > { %2760 = vrcp.f32 %v1434_v15 }
 0x2e2   : > { %v1440_v16 = vpop.xlane.xlu0 %1439 }
 0x2e3   : > { %2762 = vrcp.f32 %v1440_v16  ;;  %v1437_v17 = vpop.xlane.xlu1 %1436  ;;  %v774_v16 = vld [vmem:[%s3299_s18 + $0x10] sm:$0xff] }
 0x2e4   : > { %2764 = vrcp.f32 %v1437_v17  ;;  %v773_v17 = vld [vmem:[%s3299_s18 + $0x8] sm:$0xff] }
 0x2e7   : > { %v1443_v18 = vpop.xlane.xlu1 %1442 }
 0x2e8   : > { %2766 = vrcp.f32 %v1443_v18  ;;  %v772_v18 = vld [vmem:[%s3299_s18] sm:$0xff] }
 0x2ec   : > { %v2761_v19 = vpop.eup %2760 }
 0x2ed   : > { %v1448_v20 = vmul.f32 %v2761_v19, %v2753_v6  ;;  %v788_v19 = vld [vmem:[%s3301_s20 + $0x38] sm:$0xff] }
 0x2ef   : > { %2623 = vmatmul.mubr.msk.f32.vlgmr.msra.gmra.mxu0 %vm796_vm0, %v1448_v20  ;;  %v787_v20 = vld [vmem:[%s3301_s20 + $0x30] sm:$0xff] }
 0x2f0   : > { %v2763_v22 = vpop.eup %2762  ;;  %2631 = vmatpush3.msra.mxu0 %v1092_v21  ;;  %2632 = vmatprep.mubr.msk.f32.mxu0 %vm2835_vm1, %v2834_v13  ;;  %v786_v21 = vld [vmem:[%s3301_s20 + $0x28] sm:$0xff] }
 0x2f1   : > { %v2765_v23 = vpop.eup %2764  ;;  %v1450_v24 = vmul.f32 %v2763_v22, %v2755_v8  ;;  %2640 = vmatprep.subr.mxu0 %v2834_v13  ;;  %v785_v22 = vld [vmem:[%s3301_s20 + $0x20] sm:$0xff] }
 0x2f2   : > { %v1449_v25 = vmul.f32 %v2765_v23, %v2757_v9  ;;  %v784_v23 = vld [vmem:[%s3301_s20 + $0x18] sm:$0xff] }
 0x2f3   : > { %2633 = vmatmul.mubr.msk.f32.vlgmr.msra.gmra.mxu0 %vm796_vm0, %v1450_v24  ;;  %v2499_v24 = vld [vmem:[%s3298_s17] ss:$0 sm:$0xff] }
 0x2f4   : > { %2628 = vmatmul.mubr.msk.f32.vlgmr.msra.gmra.mxu1 %vm796_vm0, %v1449_v25  ;;  %2642 = vmatprep.mubr.msk.f32.mxu0 %vm2835_vm1, %v2834_v13 }
 0x2f5   : > { %v2767_v26 = vpop.eup %2766  ;;  %2636 = vmatpush3.msra.mxu1 %v3076_v40  ;;  %2637 = vmatprep.mubr.msk.f32.mxu1 %vm2835_vm1, %v2834_v13 }
 0x2f6   : > { %v1451_v27 = vmul.f32 %v2767_v26, %v2759_v12  ;;  %2645 = vmatprep.subr.mxu1 %v2834_v13  ;;  %2641 = vmatpush3.msra.mxu0 %v759_v29  ;;  %v2498_v12 = vld [vmem:[%s3294_s13] ss:$0 sm:$0xff]  ;;  %v783_v29 = vld [vmem:[%s3301_s20 + $0x10] sm:$0xff] }
 0x2f7   : > { %2650 = vmatprep.subr.mxu0 %v2834_v13 }
 0x2f8   : > { %2638 = vmatmul.mubr.msk.f32.vlgmr.msra.gmra.mxu1 %vm796_vm0, %v1451_v27 }
 0x2f9   : > { %2647 = vmatprep.mubr.msk.f32.mxu1 %vm2835_vm1, %v2834_v13  ;;  %2646 = vmatpush3.msra.mxu1 %v758_v28 }
 0x2fa   : > { %2655 = vmatprep.subr.mxu1 %v2834_v13 }
 0x3af   : > { %v1521_v31 = vpop.f32.mrf.mxu0 }
 0x3b0   : > { %2648 = vmatmul.mubr.msk.f32.vlgmr.msra.gmra.mxu1 %vm796_vm0, %v1521_v31  ;;  %v781_v31 = vld [vmem:[%s3301_s20] sm:$0xff] }
 0x3b1   : > { %v2624_v32 = vpop.f32.mrf.mxu0  ;;  %2656 = vmatpush3.msra.mxu1 %v761_v30  ;;  %2657 = vmatprep.mubr.msk.f32.mxu1 %vm2835_vm1, %v2834_v13  ;;  %v782_v30 = vld [vmem:[%s3301_s20 + $0x8] sm:$0xff] }
 0x3b2   : > { %2671 = vmatprep.subr.mxu1 %v2834_v13  ;;  %v2501_v32 = vld [vmem:[%s3300_s19] ss:$0 sm:$0xff] }
 0x3b3   : > { %v1667_v33 = vpop.f32.mrf.mxu0 }
 0x3b4   : > { %v1594_v35 = vpop.f32.mrf.mxu1 }
 0x3b5   : > { %2643 = vmatmul.mubr.msk.f32.vlgmr.msra.gmra.mxu0 %vm796_vm0, %v1594_v35  ;;  %v2634_v36 = vpop.f32.mrf.mxu0 }
 0x3b6   : > { %v2629_v37 = vpop.f32.mrf.mxu1  ;;  %2651 = vmatpush3.msra.mxu0 %v760_v34  ;;  %2652 = vmatprep.mubr.msk.f32.mxu0 %vm2835_vm1, %v2834_v13 }
 0x3b7   : > { %2660 = vmatprep.subr.mxu0 %v2834_v13  ;;  %v2503_v37 = vld [vmem:[%s3302_s21] ss:$0 sm:$0xff] }
 0x3b8   : > { %v1740_v38 = vpop.f32.mrf.mxu1 }
 0x3b9   : > { %2653 = vmatmul.mubr.msk.f32.vlgmr.msra.gmra.mxu0 %vm796_vm0, %v1667_v33  ;;  %2658 = vmatmul.mubr.msk.f32.vlgmr.msra.gmra.mxu1 %vm796_vm0, %v1740_v38 }
 0x3ba   : > { %v2639_v39 = vpop.f32.mrf.mxu1  ;;  %2668 = vmatprep.mubr.msk.f32.mxu0 %vm2835_vm1, %v2834_v13  ;;  %2687 = vmatprep.mubr.msk.f32.mxu1 %vm2835_vm1, %v2834_v13 }
 0x3bb   : > { %2661 = vmatpush3.msra.mxu0 %v770_v61  ;;  %2672 = vmatpush3.msra.mxu1 %v779_v1 }
 0x3bc   : > { %2662 = vmatprep.subr.mxu0 %v2834_v13  ;;  %2673 = vmatprep.subr.mxu1 %v2834_v13 }
 0x3bd   : > { %2663 = vmatpush3.msra.mxu0 %v769_v62  ;;  %2674 = vmatpush3.msra.mxu1 %v778_v2 }
 0x3be   : > { %2664 = vmatprep.subr.mxu0 %v2834_v13  ;;  %2675 = vmatprep.subr.mxu1 %v2834_v13 }
 0x3bf   : > { %2665 = vmatpush3.msra.mxu0 %v768_v63  ;;  %2676 = vmatpush3.msra.mxu1 %v777_v3 }
 0x3c0   : > { %2666 = vmatprep.subr.mxu0 %v2834_v13  ;;  %2677 = vmatprep.subr.mxu1 %v2834_v13 }
 0x3c1   : > { %2667 = vmatpush3.msra.mxu0 %v767_v0  ;;  %2678 = vmatpush3.msra.mxu1 %v776_v4 }
 0x3c2   : > { %2690 = vmatprep.subr.mxu0 %v2834_v13  ;;  %2679 = vmatprep.subr.mxu1 %v2834_v13 }
 0x3c3   : > { %2680 = vmatpush3.msra.mxu1 %v775_v5 }
 0x3c4   : > { %2681 = vmatprep.subr.mxu1 %v2834_v13 }
 0x3c5   : > { %2682 = vmatpush3.msra.mxu1 %v774_v16 }
 0x3c6   : > { %2683 = vmatprep.subr.mxu1 %v2834_v13 }
 0x3c7   : > { %2684 = vmatpush3.msra.mxu1 %v773_v17 }
 0x3c8   : > { %2685 = vmatprep.subr.mxu1 %v2834_v13 }
 0x3c9   : > { %2686 = vmatpush3.msra.mxu1 %v772_v18 }
 0x470   : > { %v1886_v40 = vpop.f32.mrf.mxu1 }
 0x472   : > { %v2649_v41 = vpop.f32.mrf.mxu1 }
 0x475   : > { %v1813_v42 = vpop.f32.mrf.mxu0 }
 0x476   : > { %v1887_v44 = vadd.f32 %v1886_v40, %v1813_v42 }
 0x477   : > { %v2644_v43 = vpop.f32.mrf.mxu0 }
 0x479   : > { %v1959_v45 = vpop.f32.mrf.mxu0  ;;  %v2033_v46 = vpop.f32.mrf.mxu1 }
 0x47a   : > { %v1963_v47 = vadd.f32 %v1959_v45, %v1887_v44 }
 0x47b   : > { %v2654_v49 = vpop.f32.mrf.mxu0  ;;  %v2659_v50 = vpop.f32.mrf.mxu1 }
 0x47c   : > { %v2037_v51 = vadd.f32 %v2033_v46, %v1963_v47 }
 0x47e   : > { %v2044_v53 = vadd.f32 %v2496_v48, %v2037_v51  ;;  %v2505_v51 = vld [vmem:[%s3295_s14] ss:$0 sm:$0xff] }
 0x480   : > { %v2045_v54 = vadd.f32 %v2044_v53, %v751_v52  ;;  %v2506_v53 = vld [vmem:[%s3296_s15] ss:$0 sm:$0xff] }
 0x482   : > { %v2047_v55 = vsel %vm2046_vm2, %v2045_v54, 0.0 }
 0x483   : > { %2048 = vadd.xlane.f32.xlu0 %v2047_v55 }
 0x50c   : > { %v2049_v56 = vpop.xlane.xlu0 %2048 }
 0x50d   : > { %v2051_v57 = vmul.f32 0.03125, %v2049_v56 }
 0x50f   : > { %v2052_v58 = vsub.f32 %v2045_v54, %v2051_v57 }
 0x511   : > { %v2053_v59 = vmul.f32 %v2052_v58, %v2052_v58 }
 0x513   : > { %v2054_v60 = vsel %vm2046_vm2, %v2053_v59, 0.0 }
 0x514   : > { %2055 = vadd.xlane.f32.xlu1 %v2054_v60 }
 0x59d   : > { %v2056_v6 = vpop.xlane.xlu1 %2055 }
 0x59e   : > { %v2057_v7 = vmul.f32 0.03125, %v2056_v6 }
 0x5a0   : > { %v2058_v8 = vadd.f32 1e-05, %v2057_v7 }
 0x5a2   : > { %2768 = vrsqrt.f32 %v2058_v8 }
 0x5af   : > { %v2769_v9 = vpop.eup %2768 }
 0x5b0   : > { %v2060_v11 = vmul.f32 %v2769_v9, %v2052_v58 }
 0x5b2   : > { %v2067_v14 = vmul.f32 %v2497_v10, %v2060_v11 }
 0x5b4   : > { %v2074_v15 = vadd.f32 %v2498_v12, %v2067_v14 }
 0x5b6   : > { %2669 = vmatmul.mubr.msk.f32.vlgmr.msra.gmra.mxu0 %vm2046_vm2, %v2074_v15 }
 0x5b7   : > { %2706 = vmatprep.mubr.msk.f32.mxu0 %vm2835_vm1, %v2834_v13  ;;  %2691 = vmatpush3.msra.mxu0 %v788_v19 }
 0x5b8   : > { %2692 = vmatprep.subr.mxu0 %v2834_v13 }
 0x5b9   : > { %2693 = vmatpush3.msra.mxu0 %v787_v20 }
 0x5ba   : > { %2694 = vmatprep.subr.mxu0 %v2834_v13 }
 0x5bb   : > { %2695 = vmatpush3.msra.mxu0 %v786_v21 }
 0x5bc   : > { %2696 = vmatprep.subr.mxu0 %v2834_v13 }
 0x5bd   : > { %2697 = vmatpush3.msra.mxu0 %v785_v22 }
 0x5be   : > { %2698 = vmatprep.subr.mxu0 %v2834_v13 }
 0x5bf   : > { %2699 = vmatpush3.msra.mxu0 %v784_v23 }
 0x5c0   : > { %2700 = vmatprep.subr.mxu0 %v2834_v13 }
 0x5c1   : > { %2701 = vmatpush3.msra.mxu0 %v783_v29 }
 0x5c2   : > { %2702 = vmatprep.subr.mxu0 %v2834_v13 }
 0x5c3   : > { %2703 = vmatpush3.msra.mxu0 %v782_v30 }
 0x5c4   : > { %2704 = vmatprep.subr.mxu0 %v2834_v13 }
 0x5c5   : > { %2705 = vmatpush3.msra.mxu0 %v781_v31 }
 0x676   : > { %v2150_v25 = vpop.f32.mrf.mxu0 }
 0x677   : > { %v2151_v26 = vadd.f32 %v2499_v24, %v2150_v25 }
 0x678   : > { %v2670_v27 = vpop.f32.mrf.mxu0 }
 0x679   : > { %v2154_v28 = vmax.f32 %v2151_v26, 0.0 }
 0x67b   : > { %2688 = vmatmul.mubr.msk.f32.vlgmr.msra.gmra.mxu1 %vm2161_vm3, %v2154_v28 }
 0x73b   : > { %v2231_v33 = vpop.f32.mrf.mxu1 }
 0x73c   : > { %v2232_v34 = vadd.f32 %v2501_v32, %v2231_v33 }
 0x73d   : > { %v2689_v35 = vpop.f32.mrf.mxu1 }
 0x73e   : > { %v2235_v36 = vmax.f32 %v2232_v34, 0.0 }
 0x740   : > { %2707 = vmatmul.mubr.msk.f32.vlgmr.msra.gmra.mxu0 %vm2161_vm3, %v2235_v36 }
 0x800   : > { %v2311_v38 = vpop.f32.mrf.mxu0 }
 0x801   : > { %v2312_v39 = vadd.f32 %v2503_v37, %v2311_v38 }
 0x802   : > { %v2708_v40 = vpop.f32.mrf.mxu0 }
 0x803   : > { %v2315_v13 = vadd.f32 %v2312_v39, %v2074_v15 }
 0x805   : > { %v2316_v41 = vsel %vm2046_vm2, %v2315_v13, 0.0 }
 0x806   : > { %2317 = vadd.xlane.f32.xlu0 %v2316_v41 }
 0x88f   : > { %v2318_v42 = vpop.xlane.xlu0 %2317 }
 0x890   : > { %v2319_v43 = vmul.f32 0.03125, %v2318_v42 }
 0x892   : > { %v2320_v44 = vsub.f32 %v2315_v13, %v2319_v43 }
 0x894   : > { %v2321_v45 = vmul.f32 %v2320_v44, %v2320_v44 }
 0x896   : > { %v2322_v46 = vsel %vm2046_vm2, %v2321_v45, 0.0 }
 0x897   : > { %2323 = vadd.xlane.f32.xlu1 %v2322_v46 }
 0x920   : > { %v2324_v47 = vpop.xlane.xlu1 %2323 }
 0x921   : > { %v2325_v48 = vmul.f32 0.03125, %v2324_v47 }
 0x923   : > { %v2326_v49 = vadd.f32 1e-05, %v2325_v48 }
 0x925   : > { %2770 = vrsqrt.f32 %v2326_v49 }
 0x932   : > { %v2771_v50 = vpop.eup %2770 }
 0x933   : > { %v2328_v52 = vmul.f32 %v2771_v50, %v2320_v44 }
 0x935   : > { %v2335_v54 = vmul.f32 %v2505_v51, %v2328_v52 }
 0x937   : > { %v2342_v55 = vadd.f32 %v2506_v53, %v2335_v54 }
 0x939   : > { %2343 = vst.msk [vmem:[%s719_s5] sm:$0xff] %vm2046_vm2, %v2342_v55 }
 0x93a   : > { %2785 = shalt.err (!%p2782_p3)
}
 0x93b   : > { %s2786_s25 = scalar_lea.hbm %s2356_s30, 128  ;;  %s2790_s29 = scalar_lea.hbm %s3339_s7, 256 }
 0x93c   : > { %p2787_p4 = scmp.ne.s32.totalorder %s2356_s30, %s2786_s25  ;;  %p2791_p9 = scmp.lt.s32.totalorder %s2356_s30, %s3339_s7 }
 0x93d   : > { %p2792_p10 = scmp.lt.s32.totalorder %s2790_s29, %s2786_s25 }
 0x93e   : > { %p2788_p7 = pnand %p2787_p4, %p2990_p5 }
 0x93f   : > { %p2793_p11 = por %p2792_p10, %p2791_p9 }
 0x940   : > { %p2789_p8 = pneg %p2788_p7 }
 0x942   : > { %p2794_p12 = pnand %p2793_p11, %p2789_p8 }
 0x944   : > { %2797 = shalt.err (!%p2794_p12)
}
 0x945   : > { %2711 = dma.vmem_to_hbm [thread:$0]  (%p2990_p5), %s2359_s26, 128, %s2356_s30, %s2345_s8  }
 0x946 PF: > { %s3340_s27 = sld [smem:[#allocation7_spill]] }
 0x947   : > { %s3341_s3 = sld [smem:[#allocation5_spill]] }
 0x94c   : > { %p2717_p13 = scmp.ge.s32.totalorder %s3340_s27, 2 }
 0x94d   : > { %s2370_s0 = sand.u32 1, %s3341_s3  }
 0x94e   : > { %p2714_p0 = pnand %p2717_p13, %p2994_p6  ;;  %s2371_s1 = scalar_lea.sflag [#allocation3], %s2370_s0 }
 0x950   : > { %p2715_p1 = pneg %p2714_p0 }
 0x952   : > { %2815 = dma.done.wait (%p2715_p1), %s2371_s1, 128  }
 0x953   : > { %2817 = vsyncadd (%p2715_p1), %s2371_s1, 4294967168  ;;  %s3343_s30 = sld [smem:[#allocation8_spill]]  ;;  %s3346_s3 = smov %s2824_s28 }
 0x954   : > { %s3344_s4 = sld [smem:[#allocation6_spill]] }
 0x955   : > { %s3345_s29 = sld [smem:[#allocation9_spill]] }
 0x959   : > { %p32_p2 = scmp.ge.s32.totalorder %s3343_s30, 4  }
 0x95a   : > { %s3347_s28 = smov %s3344_s4 }
 0x95b   :  { %34 = sbr.rel (!%p32_p2) target bundleno = 14 (0xe), region = 152 }
 0x960   :  { %2376 = vsyncpa [#allocation3], 1 }
 0x961   :  { %2378 = vsyncpa [#allocation3 + $0x1], 1 }

</bundles_post_ra>
